<compile_context>
chip_gen: v6e
topology: v6e:2x2x1
jax: 0.10.0
libtpu: 0.0.40
codegen_flags: <defaults>
</compile_context>

<pallas_src>
import jax
import jax.numpy as jnp
from jax import lax
from jax.experimental import pallas as pl
from jax.experimental.pallas import tpu as pltpu

EPS = 1e-5          # PyTorch nn.LayerNorm default eps
NEG_INF = -1e30     # finite masked-score value (avoids inf-inf risk)


# ----------------------------------------------------------------------------
# Kernel.  Grid = (B, num_query_tiles).  At query-tile 0 of each batch element
# the full-sequence K/V (per-head layout, bf16) are computed and cached in VMEM
# scratch; every grid step then processes one (TQ, E) query tile end-to-end
# (LN1 -> Q -> attention -> out-proj -> residual -> LN2 -> FFN -> residual).
# ----------------------------------------------------------------------------
def transformer_block_kernel(
    x_ref,
    ln1_g_ref, ln1_b_ref,
    wq3_ref, bq3_ref,          # (H, E, D) bf16 (scale folded), (H, 1, D) f32
    wkv3_ref, bkv3_ref,        # (H, E, 2D) bf16,               (H, 1, 2D) f32
    wo3_ref, bo_ref,           # (H, D, E) bf16,                (1, E) f32
    ln2_g_ref, ln2_b_ref,
    w1_ref, b1_ref,            # (E, FF) bf16, (1, FF) f32
    w2_ref, b2_ref,            # (FF, E) bf16, (1, E) f32
    o_ref,
    k_cache_ref, v_cache_ref,  # scratch: (H, S, D) bf16 each
):
    H, S, D = k_cache_ref.shape
    TQ = o_ref.shape[1]
    qi = pl.program_id(1)
    qs = pl.multiple_of(qi * TQ, TQ)   # global row offset of this query tile

    def layer_norm(v, g, b):           # all-f32 statistics
        mu = jnp.mean(v, axis=-1, keepdims=True)
        var = jnp.mean((v - mu) ** 2, axis=-1, keepdims=True)
        return (v - mu) * lax.rsqrt(var + EPS) * g + b

    # ---- once per batch element: fill the per-head K/V cache for the full seq ----
    @pl.when(qi == 0)
    def _():
        n1_full = layer_norm(x_ref[0], ln1_g_ref[...], ln1_b_ref[...])
        n1_full = n1_full.astype(jnp.bfloat16)                       # (S, E)

        def kv_body(h, carry):
            kv_h = jnp.dot(n1_full, wkv3_ref[h],
                           preferred_element_type=jnp.float32) + bkv3_ref[h]  # (S, 2D)
            k_cache_ref[h] = kv_h[:, :D].astype(jnp.bfloat16)
            v_cache_ref[h] = kv_h[:, D:].astype(jnp.bfloat16)
            return carry

        lax.fori_loop(0, H, kv_body, 0)

    # ---- this query tile ----
    x_tile = x_ref[0, pl.ds(qs, TQ), :]                               # (TQ, E) f32
    n1_tile = layer_norm(x_tile, ln1_g_ref[...], ln1_b_ref[...])
    n1_tile = n1_tile.astype(jnp.bfloat16)

    # In-kernel additive causal bias for this tile (f32, finite negative).
    rows = qs + lax.broadcasted_iota(jnp.int32, (TQ, S), 0)
    cols = lax.broadcasted_iota(jnp.int32, (TQ, S), 1)
    bias = jnp.where(cols <= rows, 0.0, NEG_INF).astype(jnp.float32)  # (TQ, S)

    # Contract last dims of q and k (q @ k^T) without materializing a transpose.
    NT_DIMS = (((1,), (1,)), ((), ()))

    # fori_loop over heads: bounded live ranges; every head access is a leading-dim
    # index into (H, ., D)-shaped refs (lane-dense loads/stores, no masked vst).
    # The out-projection is accumulated per head (K = D contraction); at production
    # D (64/128) this keeps the layout lane-dense at modest MXU-depth cost.
    # TODO(synk): at production S, restrict the key range to [0, qs + TQ) and use
    # flash-style online softmax over KV tiles instead of the full (TQ, S) scores.
    def head_body(h, acc):
        qh = jnp.dot(n1_tile, wq3_ref[h],
                     preferred_element_type=jnp.float32) + bq3_ref[h]   # (TQ, D) f32
        qh = qh.astype(jnp.bfloat16)
        kh = k_cache_ref[h]                                             # (S, D) bf16
        vh = v_cache_ref[h]

        s = lax.dot_general(qh, kh, NT_DIMS,
                            preferred_element_type=jnp.float32) + bias  # (TQ, S) f32
        s = s - jnp.max(s, axis=-1, keepdims=True)
        p = jnp.exp(s)
        # approx reciprocal runs on the EUP slot instead of VALU division.
        p = p * pl.reciprocal(jnp.sum(p, axis=-1, keepdims=True), approx=True)

        ctx = jnp.dot(p.astype(jnp.bfloat16), vh,
                      preferred_element_type=jnp.float32)               # (TQ, D) f32
        return acc + jnp.dot(ctx.astype(jnp.bfloat16), wo3_ref[h],
                             preferred_element_type=jnp.float32)        # (TQ, E) f32

    attn = lax.fori_loop(0, H, head_body, jnp.zeros((TQ, x_tile.shape[1]), jnp.float32))
    attn = attn + bo_ref[...]

    x1 = x_tile + attn                      # residual (dropout = identity at inference)

    # ---- ln2 + feed-forward (intermediate is only (TQ, FF) thanks to query tiling) ----
    n2 = layer_norm(x1, ln2_g_ref[...], ln2_b_ref[...]).astype(jnp.bfloat16)
    h1 = jnp.dot(n2, w1_ref[...], preferred_element_type=jnp.float32) + b1_ref[...]
    h1 = jnp.maximum(h1, 0.0).astype(jnp.bfloat16)                      # ReLU
    ff = jnp.dot(h1, w2_ref[...], preferred_element_type=jnp.float32) + b2_ref[...]

    o_ref[0] = (x1 + ff).astype(o_ref.dtype)


# ----------------------------------------------------------------------------
# Wrapper: one-time weight layout plumbing (per-head (H, E, D) projections with
# the attention scale folded into Q, bf16 weight casts), grid/BlockSpec setup.
# ----------------------------------------------------------------------------
def transformer_block(x, params, num_heads, q_block=None):
    B, S, E = x.shape
    H = num_heads
    D = E // H
    FF = params["w1"].shape[0]
    scale = 1.0 / (float(D) ** 0.5)

    if q_block is None:
        q_block = S if S <= 256 else 256
    assert S % q_block == 0 and (q_block % 8 == 0 or q_block == S)
    TQ = q_block
    NQ = S // TQ

    wqkv = params["wqkv"]        # (3E, E), PyTorch (out, in) layout
    bqkv = params["bqkv"][0]     # (3E,)

    def per_head(w_rows, b_seg, s=1.0):
        # (E_out, E_in) -> (H, E_in, D) so the kernel indexes heads on the major dim.
        w = (w_rows.T * s).reshape(E, H, D).transpose(1, 0, 2)
        b = (b_seg * s).reshape(H, 1, D)
        return w, b

    wq3, bq3 = per_head(wqkv[:E], bqkv[:E], scale)          # scale folded into Q
    wk3, bk3 = per_head(wqkv[E:2 * E], bqkv[E:2 * E])
    wv3, bv3 = per_head(wqkv[2 * E:], bqkv[2 * E:])

    wq3 = wq3.astype(jnp.bfloat16)
    wkv3 = jnp.concatenate([wk3, wv3], axis=-1).astype(jnp.bfloat16)   # (H, E, 2D)
    bkv3 = jnp.concatenate([bk3, bv3], axis=-1)                         # (H, 1, 2D) f32
    wo3 = params["wo"].T.reshape(H, D, E).astype(jnp.bfloat16)          # (H, D, E)
    w1_t = params["w1"].T.astype(jnp.bfloat16)                          # (E, FF)
    w2_t = params["w2"].T.astype(jnp.bfloat16)                          # (FF, E)

    def full(shape):
        # Grid-invariant operand: constant index_map -> DMA'd once, reused.
        # (At production sizes on v7x, also single-buffer these with
        #  pipeline_mode=pl.Buffered(1) to halve the resident weight footprint.)
        return pl.BlockSpec(shape, lambda b, q: (0,) * len(shape))

    return pl.pallas_call(
        transformer_block_kernel,
        out_shape=jax.ShapeDtypeStruct((B, S, E), x.dtype),
        grid_spec=pltpu.PrefetchScalarGridSpec(
            num_scalar_prefetch=0,
            grid=(B, NQ),
            in_specs=[
                pl.BlockSpec((1, S, E), lambda b, q: (b, 0, 0)),   # x (full seq / batch)
                full((1, E)), full((1, E)),                        # ln1 gamma, beta
                full((H, E, D)), full((H, 1, D)),                  # Wq (scaled), bq
                full((H, E, 2 * D)), full((H, 1, 2 * D)),          # Wk|Wv, bk|bv
                full((H, D, E)), full((1, E)),                     # Wo, bo
                full((1, E)), full((1, E)),                        # ln2 gamma, beta
                full((E, FF)), full((1, FF)),                      # ffn linear1
                full((FF, E)), full((1, E)),                       # ffn linear2
            ],
            out_specs=pl.BlockSpec((1, TQ, E), lambda b, q: (b, q, 0)),
            scratch_shapes=[
                pltpu.VMEM((H, S, D), jnp.bfloat16),               # K cache (per batch)
                pltpu.VMEM((H, S, D), jnp.bfloat16),               # V cache (per batch)
            ],
        ),
        compiler_params=pltpu.CompilerParams(
            # Batch axis parallel (megacore on v7x); query axis arbitrary because the
            # K/V cache is filled at qi==0 and reused by later query tiles of that b.
            dimension_semantics=("parallel", "arbitrary"),
            vmem_limit_bytes=48 * 1024 * 1024,
        ),
    )(
        x,
        params["ln1_g"], params["ln1_b"],
        wq3, bq3, wkv3, bkv3, wo3, params["bo"],
        params["ln2_g"], params["ln2_b"],
        w1_t, params["b1"], w2_t, params["b2"],
    )


# ----------------------------------------------------------------------------
# Pure-JAX float32 reference (exact softmax) for the correctness check.
# ----------------------------------------------------------------------------
def transformer_block_ref(x, params, num_heads):
    B, S, E = x.shape
    D = E // num_heads

    def layer_norm(v, g, b):
        mu = jnp.mean(v, axis=-1, keepdims=True)
        var = jnp.mean((v - mu) ** 2, axis=-1, keepdims=True)
        return (v - mu) * lax.rsqrt(var + EPS) * g + b

    norm1 = layer_norm(x, params["ln1_g"][0], params["ln1_b"][0])
    qkv = norm1 @ params["wqkv"].T + params["bqkv"][0]
    q, k, v = qkv[..., :E], qkv[..., E:2 * E], qkv[..., 2 * E:]

    def split_heads(t):  # (B,S,E) -> (B,H,S,D)
        return t.reshape(B, S, num_heads, D).transpose(0, 2, 1, 3)

    q, k, v = split_heads(q), split_heads(k), split_heads(v)
    scores = jnp.einsum("bhqd,bhkd->bhqk", q, k) / (D ** 0.5)
    causal = jnp.tril(jnp.ones((S, S), dtype=bool))
    scores = jnp.where(causal, scores, -jnp.inf)
    p = jax.nn.softmax(scores, axis=-1)
    out = jnp.einsum("bhqk,bhkd->bhqd", p, v)
    out = out.transpose(0, 2, 1, 3).reshape(B, S, E)
    attn = out @ params["wo"].T + params["bo"][0]

    x1 = x + attn
    norm2 = layer_norm(x1, params["ln2_g"][0], params["ln2_b"][0])
    h1 = jax.nn.relu(norm2 @ params["w1"].T + params["b1"][0])
    ff = h1 @ params["w2"].T + params["b2"][0]
    return x1 + ff


# ----------------------------------------------------------------------------
# Main
# ----------------------------------------------------------------------------
if __name__ == "__main__":
    # S=16 with q_block=8 exercises the 2-step query-tile pipeline (K/V cache reuse).
    B, S, E, H = 2, 16, 32, 4
    FF = 4 * E

    key = jax.random.PRNGKey(0)
    keys = jax.random.split(key, 12)

    params = {
        "ln1_g": 1.0 + 0.1 * jax.random.normal(keys[0], (1, E), jnp.float32),
        "ln1_b": 0.1 * jax.random.normal(keys[1], (1, E), jnp.float32),
        "wqkv": 0.05 * jax.random.normal(keys[2], (3 * E, E), jnp.float32),
        "bqkv": 0.05 * jax.random.normal(keys[3], (1, 3 * E), jnp.float32),
        "wo": 0.05 * jax.random.normal(keys[4], (E, E), jnp.float32),
        "bo": 0.05 * jax.random.normal(keys[5], (1, E), jnp.float32),
        "ln2_g": 1.0 + 0.1 * jax.random.normal(keys[6], (1, E), jnp.float32),
        "ln2_b": 0.1 * jax.random.normal(keys[7], (1, E), jnp.float32),
        "w1": 0.05 * jax.random.normal(keys[8], (FF, E), jnp.float32),
        "b1": 0.05 * jax.random.normal(keys[9], (1, FF), jnp.float32),
        "w2": 0.05 * jax.random.normal(keys[10], (E, FF), jnp.float32),
        "b2": 0.05 * jax.random.normal(keys[11], (1, E), jnp.float32),
    }

    x = jax.random.normal(jax.random.PRNGKey(42), (B, S, E), jnp.float32)

    out = transformer_block(x, params, num_heads=H, q_block=8)
    out = jax.block_until_ready(out)

    ref = jax.block_until_ready(transformer_block_ref(x, params, num_heads=H))

    assert out.shape == (B, S, E), out.shape
    # Tolerance reflects bf16 matmul operands + the hardware approximate reciprocal
    # in the softmax denominator (accumulations and statistics are float32).
    err = jnp.max(jnp.abs(out - ref))
    assert jnp.allclose(out, ref, rtol=2e-2, atol=2e-2), f"max abs err = {err}"

    print("KERNEL_OK")
</pallas_src>

<mosaic_0001>
module attributes {stable_mosaic.version = 11 : i64} {
  func.func @transformer_block_kernel(%arg0: i32, %arg1: i32, %arg2: memref<1x16x32xf32, #tpu.memory_space<vmem>>, %arg3: memref<1x32xf32, #tpu.memory_space<vmem>>, %arg4: memref<1x32xf32, #tpu.memory_space<vmem>>, %arg5: memref<4x32x8xbf16, #tpu.memory_space<vmem>>, %arg6: memref<4x1x8xf32, #tpu.memory_space<vmem>>, %arg7: memref<4x32x16xbf16, #tpu.memory_space<vmem>>, %arg8: memref<4x1x16xf32, #tpu.memory_space<vmem>>, %arg9: memref<4x8x32xbf16, #tpu.memory_space<vmem>>, %arg10: memref<1x32xf32, #tpu.memory_space<vmem>>, %arg11: memref<1x32xf32, #tpu.memory_space<vmem>>, %arg12: memref<1x32xf32, #tpu.memory_space<vmem>>, %arg13: memref<32x128xbf16, #tpu.memory_space<vmem>>, %arg14: memref<1x128xf32, #tpu.memory_space<vmem>>, %arg15: memref<128x32xbf16, #tpu.memory_space<vmem>>, %arg16: memref<1x32xf32, #tpu.memory_space<vmem>>, %arg17: memref<1x8x32xf32, #tpu.memory_space<vmem>>, %arg18: memref<4x16x8xbf16, #tpu.memory_space<vmem>>, %arg19: memref<4x16x8xbf16, #tpu.memory_space<vmem>>) attributes {dimension_semantics = [#tpu.dimension_semantics<parallel>, #tpu.dimension_semantics<arbitrary>], iteration_bounds = array<i64: 2, 2>, scalar_prefetch = 0 : i64, scratch_operands = 2 : i64, tpu.core_type = #tpu.core_type<tc>, window_params = [{transform_indices = @transform_0, window_bounds = array<i64: 1, 16, 32>}, {pipeline_mode = #tpu.pipeline_mode<synchronous>, transform_indices = @transform_1, window_bounds = array<i64: 1, 32>}, {pipeline_mode = #tpu.pipeline_mode<synchronous>, transform_indices = @transform_2, window_bounds = array<i64: 1, 32>}, {pipeline_mode = #tpu.pipeline_mode<synchronous>, transform_indices = @transform_3, window_bounds = array<i64: 4, 32, 8>}, {pipeline_mode = #tpu.pipeline_mode<synchronous>, transform_indices = @transform_4, window_bounds = array<i64: 4, 1, 8>}, {pipeline_mode = #tpu.pipeline_mode<synchronous>, transform_indices = @transform_5, window_bounds = array<i64: 4, 32, 16>}, {pipeline_mode = #tpu.pipeline_mode<synchronous>, transform_indices = @transform_6, window_bounds = array<i64: 4, 1, 16>}, {pipeline_mode = #tpu.pipeline_mode<synchronous>, transform_indices = @transform_7, window_bounds = array<i64: 4, 8, 32>}, {pipeline_mode = #tpu.pipeline_mode<synchronous>, transform_indices = @transform_8, window_bounds = array<i64: 1, 32>}, {pipeline_mode = #tpu.pipeline_mode<synchronous>, transform_indices = @transform_9, window_bounds = array<i64: 1, 32>}, {pipeline_mode = #tpu.pipeline_mode<synchronous>, transform_indices = @transform_10, window_bounds = array<i64: 1, 32>}, {pipeline_mode = #tpu.pipeline_mode<synchronous>, transform_indices = @transform_11, window_bounds = array<i64: 32, 128>}, {pipeline_mode = #tpu.pipeline_mode<synchronous>, transform_indices = @transform_12, window_bounds = array<i64: 1, 128>}, {pipeline_mode = #tpu.pipeline_mode<synchronous>, transform_indices = @transform_13, window_bounds = array<i64: 128, 32>}, {pipeline_mode = #tpu.pipeline_mode<synchronous>, transform_indices = @transform_14, window_bounds = array<i64: 1, 32>}, {transform_indices = @transform_15, window_bounds = array<i64: 1, 8, 32>}]} {
    %c8_i32 = arith.constant 8 : i32
    %0 = arith.muli %arg1, %c8_i32 : i32
    %1 = tpu.assume_multiple %0, 8 : i32
    %c0_i32 = arith.constant 0 : i32
    %2 = arith.cmpi eq, %arg1, %c0_i32 : i32
    %3 = arith.extui %2 : i1 to i32
    %c0_i32_0 = arith.constant 0 : i32
    %4 = arith.cmpi ne, %3, %c0_i32_0 : i32
    scf.if %4 {
      %c0_40 = arith.constant 0 : index
      %c0_41 = arith.constant 0 : index
      %c0_42 = arith.constant 0 : index
      %90 = vector.load %arg2[%c0_40, %c0_41, %c0_42] : memref<1x16x32xf32, #tpu.memory_space<vmem>>, vector<1x16x32xf32>
      %91 = vector.shape_cast %90 : vector<1x16x32xf32> to vector<16x32xf32>
      %c0_43 = arith.constant 0 : index
      %c0_44 = arith.constant 0 : index
      %92 = vector.load %arg3[%c0_43, %c0_44] : memref<1x32xf32, #tpu.memory_space<vmem>>, vector<1x32xf32>
      %c0_45 = arith.constant 0 : index
      %c0_46 = arith.constant 0 : index
      %93 = vector.load %arg4[%c0_45, %c0_46] : memref<1x32xf32, #tpu.memory_space<vmem>>, vector<1x32xf32>
      %cst_47 = arith.constant dense<0.000000e+00> : vector<16xf32>
      %94 = vector.multi_reduction <add>, %91, %cst_47 [1] : vector<16x32xf32> to vector<16xf32>
      %95 = vector.shape_cast %94 : vector<16xf32> to vector<16x1xf32>
      %cst_48 = arith.constant 3.200000e+01 : f32
      %96 = vector.broadcast %cst_48 : f32 to vector<16x1xf32>
      %97 = arith.divf %95, %96 : vector<16x1xf32>
      %98 = vector.broadcast %97 : vector<16x1xf32> to vector<16x32xf32>
      %99 = arith.subf %91, %98 : vector<16x32xf32>
      %100 = arith.mulf %99, %99 : vector<16x32xf32>
      %cst_49 = arith.constant dense<0.000000e+00> : vector<16xf32>
      %101 = vector.multi_reduction <add>, %100, %cst_49 [1] : vector<16x32xf32> to vector<16xf32>
      %102 = vector.shape_cast %101 : vector<16xf32> to vector<16x1xf32>
      %cst_50 = arith.constant 3.200000e+01 : f32
      %103 = vector.broadcast %cst_50 : f32 to vector<16x1xf32>
      %104 = arith.divf %102, %103 : vector<16x1xf32>
      %105 = vector.broadcast %97 : vector<16x1xf32> to vector<16x32xf32>
      %106 = arith.subf %91, %105 : vector<16x32xf32>
      %cst_51 = arith.constant 9.99999974E-6 : f32
      %107 = vector.broadcast %cst_51 : f32 to vector<16x1xf32>
      %108 = arith.addf %104, %107 : vector<16x1xf32>
      %109 = math.rsqrt %108 : vector<16x1xf32>
      %110 = vector.broadcast %109 : vector<16x1xf32> to vector<16x32xf32>
      %111 = arith.mulf %106, %110 : vector<16x32xf32>
      %112 = vector.broadcast %92 : vector<1x32xf32> to vector<16x32xf32>
      %113 = arith.mulf %111, %112 : vector<16x32xf32>
      %114 = vector.broadcast %93 : vector<1x32xf32> to vector<16x32xf32>
      %115 = arith.addf %113, %114 : vector<16x32xf32>
      %116 = arith.truncf %115 : vector<16x32xf32> to vector<16x32xbf16>
      %c0_i32_52 = arith.constant 0 : i32
      %c4_i32_53 = arith.constant 4 : i32
      %117 = arith.addi %c0_i32_52, %c4_i32_53 : i32
      %c1_i32_54 = arith.constant 1 : i32
      scf.for %arg20 = %c0_i32_52 to %117 step %c1_i32_54  : i32 {
        %118 = arith.index_cast %arg20 : i32 to index
        %c0_56 = arith.constant 0 : index
        %c0_57 = arith.constant 0 : index
        %119 = vector.load %arg7[%118, %c0_56, %c0_57] : memref<4x32x16xbf16, #tpu.memory_space<vmem>>, vector<1x32x16xbf16>
        %120 = vector.shape_cast %119 : vector<1x32x16xbf16> to vector<32x16xbf16>
        %cst_58 = arith.constant dense<0.000000e+00> : vector<16x16xf32>
        %121 = tpu.matmul %116, %120, %cst_58 {dimension_numbers = #tpu.dot_dimension_numbers<[1], [0], [0], [1], [0, 0, 1, 1], [], []>} : vector<16x32xbf16>, vector<32x16xbf16>, vector<16x16xf32> -> vector<16x16xf32>
        %122 = arith.index_cast %arg20 : i32 to index
        %c0_59 = arith.constant 0 : index
        %c0_60 = arith.constant 0 : index
        %123 = vector.load %arg8[%122, %c0_59, %c0_60] : memref<4x1x16xf32, #tpu.memory_space<vmem>>, vector<1x1x16xf32>
        %124 = vector.shape_cast %123 : vector<1x1x16xf32> to vector<1x16xf32>
        %125 = vector.broadcast %124 : vector<1x16xf32> to vector<16x16xf32>
        %126 = arith.addf %121, %125 : vector<16x16xf32>
        %127 = vector.extract_strided_slice %126 {offsets = [0, 0], sizes = [16, 8], strides = [1, 1]} : vector<16x16xf32> to vector<16x8xf32>
        %128 = arith.truncf %127 : vector<16x8xf32> to vector<16x8xbf16>
        %129 = arith.index_cast %arg20 : i32 to index
        %c0_61 = arith.constant 0 : index
        %c0_62 = arith.constant 0 : index
        %130 = vector.load %arg18[%129, %c0_61, %c0_62] : memref<4x16x8xbf16, #tpu.memory_space<vmem>>, vector<1x16x8xbf16>
        %131 = vector.shape_cast %130 : vector<1x16x8xbf16> to vector<16x8xbf16>
        %132 = vector.shape_cast %128 : vector<16x8xbf16> to vector<1x16x8xbf16>
        tpu.vector_store %arg18[%129, %c0_61, %c0_62], %132 {strides = array<i32>} : memref<4x16x8xbf16, #tpu.memory_space<vmem>>, vector<1x16x8xbf16>,
        %133 = vector.extract_strided_slice %126 {offsets = [0, 8], sizes = [16, 8], strides = [1, 1]} : vector<16x16xf32> to vector<16x8xf32>
        %134 = arith.truncf %133 : vector<16x8xf32> to vector<16x8xbf16>
        %135 = arith.index_cast %arg20 : i32 to index
        %c0_63 = arith.constant 0 : index
        %c0_64 = arith.constant 0 : index
        %136 = vector.load %arg19[%135, %c0_63, %c0_64] : memref<4x16x8xbf16, #tpu.memory_space<vmem>>, vector<1x16x8xbf16>
        %137 = vector.shape_cast %136 : vector<1x16x8xbf16> to vector<16x8xbf16>
        %138 = vector.shape_cast %134 : vector<16x8xbf16> to vector<1x16x8xbf16>
        tpu.vector_store %arg19[%135, %c0_63, %c0_64], %138 {strides = array<i32>} : memref<4x16x8xbf16, #tpu.memory_space<vmem>>, vector<1x16x8xbf16>,
      }
      %c4_i32_55 = arith.constant 4 : i32
    } else {
    }
    %c0 = arith.constant 0 : index
    %5 = arith.index_cast %1 : i32 to index
    %c0_1 = arith.constant 0 : index
    %6 = vector.load %arg2[%c0, %5, %c0_1] : memref<1x16x32xf32, #tpu.memory_space<vmem>>, vector<1x8x32xf32>
    %7 = vector.shape_cast %6 : vector<1x8x32xf32> to vector<8x32xf32>
    %c0_2 = arith.constant 0 : index
    %c0_3 = arith.constant 0 : index
    %8 = vector.load %arg3[%c0_2, %c0_3] : memref<1x32xf32, #tpu.memory_space<vmem>>, vector<1x32xf32>
    %c0_4 = arith.constant 0 : index
    %c0_5 = arith.constant 0 : index
    %9 = vector.load %arg4[%c0_4, %c0_5] : memref<1x32xf32, #tpu.memory_space<vmem>>, vector<1x32xf32>
    %cst = arith.constant dense<0.000000e+00> : vector<8xf32>
    %10 = vector.multi_reduction <add>, %7, %cst [1] : vector<8x32xf32> to vector<8xf32>
    %11 = vector.shape_cast %10 : vector<8xf32> to vector<8x1xf32>
    %cst_6 = arith.constant 3.200000e+01 : f32
    %12 = vector.broadcast %cst_6 : f32 to vector<8x1xf32>
    %13 = arith.divf %11, %12 : vector<8x1xf32>
    %14 = vector.broadcast %13 : vector<8x1xf32> to vector<8x32xf32>
    %15 = arith.subf %7, %14 : vector<8x32xf32>
    %16 = arith.mulf %15, %15 : vector<8x32xf32>
    %cst_7 = arith.constant dense<0.000000e+00> : vector<8xf32>
    %17 = vector.multi_reduction <add>, %16, %cst_7 [1] : vector<8x32xf32> to vector<8xf32>
    %18 = vector.shape_cast %17 : vector<8xf32> to vector<8x1xf32>
    %cst_8 = arith.constant 3.200000e+01 : f32
    %19 = vector.broadcast %cst_8 : f32 to vector<8x1xf32>
    %20 = arith.divf %18, %19 : vector<8x1xf32>
    %21 = vector.broadcast %13 : vector<8x1xf32> to vector<8x32xf32>
    %22 = arith.subf %7, %21 : vector<8x32xf32>
    %cst_9 = arith.constant 9.99999974E-6 : f32
    %23 = vector.broadcast %cst_9 : f32 to vector<8x1xf32>
    %24 = arith.addf %20, %23 : vector<8x1xf32>
    %25 = math.rsqrt %24 : vector<8x1xf32>
    %26 = vector.broadcast %25 : vector<8x1xf32> to vector<8x32xf32>
    %27 = arith.mulf %22, %26 : vector<8x32xf32>
    %28 = vector.broadcast %8 : vector<1x32xf32> to vector<8x32xf32>
    %29 = arith.mulf %27, %28 : vector<8x32xf32>
    %30 = vector.broadcast %9 : vector<1x32xf32> to vector<8x32xf32>
    %31 = arith.addf %29, %30 : vector<8x32xf32>
    %32 = arith.truncf %31 : vector<8x32xf32> to vector<8x32xbf16>
    %33 = tpu.iota {dimensions = array<i32: 0>} : vector<8x16xi32>
    %34 = vector.broadcast %1 : i32 to vector<8x16xi32>
    %35 = arith.addi %34, %33 : vector<8x16xi32>
    %36 = tpu.iota {dimensions = array<i32: 1>} : vector<8x16xi32>
    %37 = arith.cmpi sle, %36, %35 : vector<8x16xi32>
    %cst_10 = arith.constant 0.000000e+00 : f32
    %cst_11 = arith.constant -1.000000e+30 : f32
    %38 = vector.broadcast %cst_10 : f32 to vector<8x16xf32>
    %39 = vector.broadcast %cst_11 : f32 to vector<8x16xf32>
    %40 = arith.select %37, %38, %39 : vector<8x16xi1>, vector<8x16xf32>
    %cst_12 = arith.constant 0.000000e+00 : f32
    %41 = vector.broadcast %cst_12 : f32 to vector<8x32xf32>
    %c0_i32_13 = arith.constant 0 : i32
    %c4_i32 = arith.constant 4 : i32
    %42 = arith.addi %c0_i32_13, %c4_i32 : i32
    %c1_i32 = arith.constant 1 : i32
    %43 = scf.for %arg20 = %c0_i32_13 to %42 step %c1_i32 iter_args(%arg21 = %41) -> (vector<8x32xf32>)  : i32 {
      %90 = arith.index_cast %arg20 : i32 to index
      %c0_40 = arith.constant 0 : index
      %c0_41 = arith.constant 0 : index
      %91 = vector.load %arg5[%90, %c0_40, %c0_41] : memref<4x32x8xbf16, #tpu.memory_space<vmem>>, vector<1x32x8xbf16>
      %92 = vector.shape_cast %91 : vector<1x32x8xbf16> to vector<32x8xbf16>
      %cst_42 = arith.constant dense<0.000000e+00> : vector<8x8xf32>
      %93 = tpu.matmul %32, %92, %cst_42 {dimension_numbers = #tpu.dot_dimension_numbers<[1], [0], [0], [1], [0, 0, 1, 1], [], []>} : vector<8x32xbf16>, vector<32x8xbf16>, vector<8x8xf32> -> vector<8x8xf32>
      %94 = arith.index_cast %arg20 : i32 to index
      %c0_43 = arith.constant 0 : index
      %c0_44 = arith.constant 0 : index
      %95 = vector.load %arg6[%94, %c0_43, %c0_44] : memref<4x1x8xf32, #tpu.memory_space<vmem>>, vector<1x1x8xf32>
      %96 = vector.shape_cast %95 : vector<1x1x8xf32> to vector<1x8xf32>
      %97 = vector.broadcast %96 : vector<1x8xf32> to vector<8x8xf32>
      %98 = arith.addf %93, %97 : vector<8x8xf32>
      %99 = arith.truncf %98 : vector<8x8xf32> to vector<8x8xbf16>
      %100 = arith.index_cast %arg20 : i32 to index
      %c0_45 = arith.constant 0 : index
      %c0_46 = arith.constant 0 : index
      %101 = vector.load %arg18[%100, %c0_45, %c0_46] : memref<4x16x8xbf16, #tpu.memory_space<vmem>>, vector<1x16x8xbf16>
      %102 = vector.shape_cast %101 : vector<1x16x8xbf16> to vector<16x8xbf16>
      %103 = arith.index_cast %arg20 : i32 to index
      %c0_47 = arith.constant 0 : index
      %c0_48 = arith.constant 0 : index
      %104 = vector.load %arg19[%103, %c0_47, %c0_48] : memref<4x16x8xbf16, #tpu.memory_space<vmem>>, vector<1x16x8xbf16>
      %105 = vector.shape_cast %104 : vector<1x16x8xbf16> to vector<16x8xbf16>
      %cst_49 = arith.constant dense<0.000000e+00> : vector<8x16xf32>
      %106 = tpu.matmul %99, %102, %cst_49 {dimension_numbers = #tpu.dot_dimension_numbers<[1], [1], [0], [0], [0, 0, 1, 0], [], []>} : vector<8x8xbf16>, vector<16x8xbf16>, vector<8x16xf32> -> vector<8x16xf32>
      %107 = arith.addf %106, %40 : vector<8x16xf32>
      %cst_50 = arith.constant dense<0xFF800000> : vector<8xf32>
      %108 = vector.multi_reduction <maximumf>, %107, %cst_50 [1] : vector<8x16xf32> to vector<8xf32>
      %109 = vector.shape_cast %108 : vector<8xf32> to vector<8x1xf32>
      %110 = vector.broadcast %109 : vector<8x1xf32> to vector<8x16xf32>
      %111 = arith.subf %107, %110 : vector<8x16xf32>
      %112 = math.exp %111 : vector<8x16xf32>
      %cst_51 = arith.constant dense<0.000000e+00> : vector<8xf32>
      %113 = vector.multi_reduction <add>, %112, %cst_51 [1] : vector<8x16xf32> to vector<8xf32>
      %114 = vector.shape_cast %113 : vector<8xf32> to vector<8x1xf32>
      %115 = tpu.reciprocal %114 {approx = true} : vector<8x1xf32> -> vector<8x1xf32>
      %116 = vector.broadcast %115 : vector<8x1xf32> to vector<8x16xf32>
      %117 = arith.mulf %112, %116 : vector<8x16xf32>
      %118 = arith.truncf %117 : vector<8x16xf32> to vector<8x16xbf16>
      %cst_52 = arith.constant dense<0.000000e+00> : vector<8x8xf32>
      %119 = tpu.matmul %118, %105, %cst_52 {dimension_numbers = #tpu.dot_dimension_numbers<[1], [0], [0], [1], [0, 0, 1, 1], [], []>} : vector<8x16xbf16>, vector<16x8xbf16>, vector<8x8xf32> -> vector<8x8xf32>
      %120 = arith.truncf %119 : vector<8x8xf32> to vector<8x8xbf16>
      %121 = arith.index_cast %arg20 : i32 to index
      %c0_53 = arith.constant 0 : index
      %c0_54 = arith.constant 0 : index
      %122 = vector.load %arg9[%121, %c0_53, %c0_54] : memref<4x8x32xbf16, #tpu.memory_space<vmem>>, vector<1x8x32xbf16>
      %123 = vector.shape_cast %122 : vector<1x8x32xbf16> to vector<8x32xbf16>
      %cst_55 = arith.constant dense<0.000000e+00> : vector<8x32xf32>
      %124 = tpu.matmul %120, %123, %cst_55 {dimension_numbers = #tpu.dot_dimension_numbers<[1], [0], [0], [1], [0, 0, 1, 1], [], []>} : vector<8x8xbf16>, vector<8x32xbf16>, vector<8x32xf32> -> vector<8x32xf32>
      %125 = arith.addf %arg21, %124 : vector<8x32xf32>
      scf.yield %125 : vector<8x32xf32>
    }
    %c4_i32_14 = arith.constant 4 : i32
    %c0_15 = arith.constant 0 : index
    %c0_16 = arith.constant 0 : index
    %44 = vector.load %arg10[%c0_15, %c0_16] : memref<1x32xf32, #tpu.memory_space<vmem>>, vector<1x32xf32>
    %45 = vector.broadcast %44 : vector<1x32xf32> to vector<8x32xf32>
    %46 = arith.addf %43, %45 : vector<8x32xf32>
    %47 = arith.addf %7, %46 : vector<8x32xf32>
    %c0_17 = arith.constant 0 : index
    %c0_18 = arith.constant 0 : index
    %48 = vector.load %arg11[%c0_17, %c0_18] : memref<1x32xf32, #tpu.memory_space<vmem>>, vector<1x32xf32>
    %c0_19 = arith.constant 0 : index
    %c0_20 = arith.constant 0 : index
    %49 = vector.load %arg12[%c0_19, %c0_20] : memref<1x32xf32, #tpu.memory_space<vmem>>, vector<1x32xf32>
    %cst_21 = arith.constant dense<0.000000e+00> : vector<8xf32>
    %50 = vector.multi_reduction <add>, %47, %cst_21 [1] : vector<8x32xf32> to vector<8xf32>
    %51 = vector.shape_cast %50 : vector<8xf32> to vector<8x1xf32>
    %cst_22 = arith.constant 3.200000e+01 : f32
    %52 = vector.broadcast %cst_22 : f32 to vector<8x1xf32>
    %53 = arith.divf %51, %52 : vector<8x1xf32>
    %54 = vector.broadcast %53 : vector<8x1xf32> to vector<8x32xf32>
    %55 = arith.subf %47, %54 : vector<8x32xf32>
    %56 = arith.mulf %55, %55 : vector<8x32xf32>
    %cst_23 = arith.constant dense<0.000000e+00> : vector<8xf32>
    %57 = vector.multi_reduction <add>, %56, %cst_23 [1] : vector<8x32xf32> to vector<8xf32>
    %58 = vector.shape_cast %57 : vector<8xf32> to vector<8x1xf32>
    %cst_24 = arith.constant 3.200000e+01 : f32
    %59 = vector.broadcast %cst_24 : f32 to vector<8x1xf32>
    %60 = arith.divf %58, %59 : vector<8x1xf32>
    %61 = vector.broadcast %53 : vector<8x1xf32> to vector<8x32xf32>
    %62 = arith.subf %47, %61 : vector<8x32xf32>
    %cst_25 = arith.constant 9.99999974E-6 : f32
    %63 = vector.broadcast %cst_25 : f32 to vector<8x1xf32>
    %64 = arith.addf %60, %63 : vector<8x1xf32>
    %65 = math.rsqrt %64 : vector<8x1xf32>
    %66 = vector.broadcast %65 : vector<8x1xf32> to vector<8x32xf32>
    %67 = arith.mulf %62, %66 : vector<8x32xf32>
    %68 = vector.broadcast %48 : vector<1x32xf32> to vector<8x32xf32>
    %69 = arith.mulf %67, %68 : vector<8x32xf32>
    %70 = vector.broadcast %49 : vector<1x32xf32> to vector<8x32xf32>
    %71 = arith.addf %69, %70 : vector<8x32xf32>
    %72 = arith.truncf %71 : vector<8x32xf32> to vector<8x32xbf16>
    %c0_26 = arith.constant 0 : index
    %c0_27 = arith.constant 0 : index
    %73 = vector.load %arg13[%c0_26, %c0_27] : memref<32x128xbf16, #tpu.memory_space<vmem>>, vector<32x128xbf16>
    %cst_28 = arith.constant dense<0.000000e+00> : vector<8x128xf32>
    %74 = tpu.matmul %72, %73, %cst_28 {dimension_numbers = #tpu.dot_dimension_numbers<[1], [0], [0], [1], [0, 0, 1, 1], [], []>} : vector<8x32xbf16>, vector<32x128xbf16>, vector<8x128xf32> -> vector<8x128xf32>
    %c0_29 = arith.constant 0 : index
    %c0_30 = arith.constant 0 : index
    %75 = vector.load %arg14[%c0_29, %c0_30] : memref<1x128xf32, #tpu.memory_space<vmem>>, vector<1x128xf32>
    %76 = vector.broadcast %75 : vector<1x128xf32> to vector<8x128xf32>
    %77 = arith.addf %74, %76 : vector<8x128xf32>
    %cst_31 = arith.constant 0.000000e+00 : f32
    %78 = vector.broadcast %cst_31 : f32 to vector<8x128xf32>
    %79 = arith.maximumf %77, %78 : vector<8x128xf32>
    %80 = arith.truncf %79 : vector<8x128xf32> to vector<8x128xbf16>
    %c0_32 = arith.constant 0 : index
    %c0_33 = arith.constant 0 : index
    %81 = vector.load %arg15[%c0_32, %c0_33] : memref<128x32xbf16, #tpu.memory_space<vmem>>, vector<128x32xbf16>
    %cst_34 = arith.constant dense<0.000000e+00> : vector<8x32xf32>
    %82 = tpu.matmul %80, %81, %cst_34 {dimension_numbers = #tpu.dot_dimension_numbers<[1], [0], [0], [1], [0, 0, 1, 1], [], []>} : vector<8x128xbf16>, vector<128x32xbf16>, vector<8x32xf32> -> vector<8x32xf32>
    %c0_35 = arith.constant 0 : index
    %c0_36 = arith.constant 0 : index
    %83 = vector.load %arg16[%c0_35, %c0_36] : memref<1x32xf32, #tpu.memory_space<vmem>>, vector<1x32xf32>
    %84 = vector.broadcast %83 : vector<1x32xf32> to vector<8x32xf32>
    %85 = arith.addf %82, %84 : vector<8x32xf32>
    %86 = arith.addf %47, %85 : vector<8x32xf32>
    %c0_37 = arith.constant 0 : index
    %c0_38 = arith.constant 0 : index
    %c0_39 = arith.constant 0 : index
    %87 = vector.load %arg17[%c0_37, %c0_38, %c0_39] : memref<1x8x32xf32, #tpu.memory_space<vmem>>, vector<1x8x32xf32>
    %88 = vector.shape_cast %87 : vector<1x8x32xf32> to vector<8x32xf32>
    %89 = vector.shape_cast %86 : vector<8x32xf32> to vector<1x8x32xf32>
    tpu.vector_store %arg17[%c0_37, %c0_38, %c0_39], %89 {strides = array<i32>} : memref<1x8x32xf32, #tpu.memory_space<vmem>>, vector<1x8x32xf32>,
    return
  }
  func.func @transform_0(%arg0: i32, %arg1: i32) -> (i32, i32, i32) {
    %c0_i32 = arith.constant 0 : i32
    %c0_i32_0 = arith.constant 0 : i32
    %c0_i32_1 = arith.constant 0 : i32
    return %arg0, %c0_i32, %c0_i32_0 : i32, i32, i32
  }
  func.func @transform_1(%arg0: i32, %arg1: i32) -> (i32, i32) {
    %c0_i32 = arith.constant 0 : i32
    %c0_i32_0 = arith.constant 0 : i32
    %c0_i32_1 = arith.constant 0 : i32
    return %c0_i32, %c0_i32_0 : i32, i32
  }
  func.func @transform_2(%arg0: i32, %arg1: i32) -> (i32, i32) {
    %c0_i32 = arith.constant 0 : i32
    %c0_i32_0 = arith.constant 0 : i32
    %c0_i32_1 = arith.constant 0 : i32
    return %c0_i32, %c0_i32_0 : i32, i32
  }
  func.func @transform_3(%arg0: i32, %arg1: i32) -> (i32, i32, i32) {
    %c0_i32 = arith.constant 0 : i32
    %c0_i32_0 = arith.constant 0 : i32
    %c0_i32_1 = arith.constant 0 : i32
    %c0_i32_2 = arith.constant 0 : i32
    return %c0_i32, %c0_i32_0, %c0_i32_1 : i32, i32, i32
  }
  func.func @transform_4(%arg0: i32, %arg1: i32) -> (i32, i32, i32) {
    %c0_i32 = arith.constant 0 : i32
    %c0_i32_0 = arith.constant 0 : i32
    %c0_i32_1 = arith.constant 0 : i32
    %c0_i32_2 = arith.constant 0 : i32
    return %c0_i32, %c0_i32_0, %c0_i32_1 : i32, i32, i32
  }
  func.func @transform_5(%arg0: i32, %arg1: i32) -> (i32, i32, i32) {
    %c0_i32 = arith.constant 0 : i32
    %c0_i32_0 = arith.constant 0 : i32
    %c0_i32_1 = arith.constant 0 : i32
    %c0_i32_2 = arith.constant 0 : i32
    return %c0_i32, %c0_i32_0, %c0_i32_1 : i32, i32, i32
  }
  func.func @transform_6(%arg0: i32, %arg1: i32) -> (i32, i32, i32) {
    %c0_i32 = arith.constant 0 : i32
    %c0_i32_0 = arith.constant 0 : i32
    %c0_i32_1 = arith.constant 0 : i32
    %c0_i32_2 = arith.constant 0 : i32
    return %c0_i32, %c0_i32_0, %c0_i32_1 : i32, i32, i32
  }
  func.func @transform_7(%arg0: i32, %arg1: i32) -> (i32, i32, i32) {
    %c0_i32 = arith.constant 0 : i32
    %c0_i32_0 = arith.constant 0 : i32
    %c0_i32_1 = arith.constant 0 : i32
    %c0_i32_2 = arith.constant 0 : i32
    return %c0_i32, %c0_i32_0, %c0_i32_1 : i32, i32, i32
  }
  func.func @transform_8(%arg0: i32, %arg1: i32) -> (i32, i32) {
    %c0_i32 = arith.constant 0 : i32
    %c0_i32_0 = arith.constant 0 : i32
    %c0_i32_1 = arith.constant 0 : i32
    return %c0_i32, %c0_i32_0 : i32, i32
  }
  func.func @transform_9(%arg0: i32, %arg1: i32) -> (i32, i32) {
    %c0_i32 = arith.constant 0 : i32
    %c0_i32_0 = arith.constant 0 : i32
    %c0_i32_1 = arith.constant 0 : i32
    return %c0_i32, %c0_i32_0 : i32, i32
  }
  func.func @transform_10(%arg0: i32, %arg1: i32) -> (i32, i32) {
    %c0_i32 = arith.constant 0 : i32
    %c0_i32_0 = arith.constant 0 : i32
    %c0_i32_1 = arith.constant 0 : i32
    return %c0_i32, %c0_i32_0 : i32, i32
  }
  func.func @transform_11(%arg0: i32, %arg1: i32) -> (i32, i32) {
    %c0_i32 = arith.constant 0 : i32
    %c0_i32_0 = arith.constant 0 : i32
    %c0_i32_1 = arith.constant 0 : i32
    return %c0_i32, %c0_i32_0 : i32, i32
  }
  func.func @transform_12(%arg0: i32, %arg1: i32) -> (i32, i32) {
    %c0_i32 = arith.constant 0 : i32
    %c0_i32_0 = arith.constant 0 : i32
    %c0_i32_1 = arith.constant 0 : i32
    return %c0_i32, %c0_i32_0 : i32, i32
  }
  func.func @transform_13(%arg0: i32, %arg1: i32) -> (i32, i32) {
    %c0_i32 = arith.constant 0 : i32
    %c0_i32_0 = arith.constant 0 : i32
    %c0_i32_1 = arith.constant 0 : i32
    return %c0_i32, %c0_i32_0 : i32, i32
  }
  func.func @transform_14(%arg0: i32, %arg1: i32) -> (i32, i32) {
    %c0_i32 = arith.constant 0 : i32
    %c0_i32_0 = arith.constant 0 : i32
    %c0_i32_1 = arith.constant 0 : i32
    return %c0_i32, %c0_i32_0 : i32, i32
  }
  func.func @transform_15(%arg0: i32, %arg1: i32) -> (i32, i32, i32) {
    %c0_i32 = arith.constant 0 : i32
    %c0_i32_0 = arith.constant 0 : i32
    return %arg0, %arg1, %c0_i32 : i32, i32, i32
  }
}

</mosaic_0001>

<bundles_post_ra>
// kernel: tpu_custom_call.1
= control target key start
LH: loop header
LB: loop body
LE: loop exit
PB: predicated region body
PF: predicated region fallthrough
CT: control target
= control target key end

     0   :  { %s2099_s0 = inlined_call_operand.vmem [shape: f32[2,16,32], index: 0, kind: input, shape index: {}]   ;;  %s2100_s1 = inlined_call_operand.vmem [shape: f32[1,32], index: 1, kind: input, shape index: {}]   ;;  %s2101_s2 = inlined_call_operand.vmem [shape: f32[1,32], index: 2, kind: input, shape index: {}]   ;;  %s2102_s3 = inlined_call_operand.vmem [shape: bf16[4,32,8], index: 3, kind: input, shape index: {}]   ;;  %s2103_s4 = inlined_call_operand.vmem [shape: f32[4,1,8], index: 4, kind: input, shape index: {}]   ;;  %s2104_s5 = inlined_call_operand.vmem [shape: bf16[4,32,16], index: 5, kind: input, shape index: {}]   ;;  %s2105_s6 = inlined_call_operand.vmem [shape: f32[4,1,16], index: 6, kind: input, shape index: {}]   ;;  %s2106_s7 = inlined_call_operand.vmem [shape: bf16[4,8,32], index: 7, kind: input, shape index: {}]   ;;  %s2107_s8 = inlined_call_operand.vmem [shape: f32[1,32], index: 8, kind: input, shape index: {}]   ;;  %s2108_s9 = inlined_call_operand.vmem [shape: f32[1,32], index: 9, kind: input, shape index: {}]   ;;  %s2109_s10 = inlined_call_operand.vmem [shape: f32[1,32], index: 10, kind: input, shape index: {}]   ;;  %s2110_s11 = inlined_call_operand.vmem [shape: bf16[32,128], index: 11, kind: input, shape index: {}]   ;;  %s2111_s12 = inlined_call_operand.vmem [shape: f32[1,128], index: 12, kind: input, shape index: {}]   ;;  %s2112_s13 = inlined_call_operand.vmem [shape: bf16[128,32], index: 13, kind: input, shape index: {}]   ;;  %s2113_s14 = inlined_call_operand.vmem [shape: f32[1,32], index: 14, kind: input, shape index: {}]   ;;  %s2114_s15 = inlined_call_operand.hbm [shape: f32[2,16,32], index: 15, kind: output, shape index: {}]  }
   0x1   :  { %2122 = sst [smem:[#allocation13_spill]] %s2099_s0 }
   0x2   :  { %2123 = sst [smem:[#allocation14_spill]] %s2100_s1 }
   0x3   :  { %2124 = sst [smem:[#allocation15_spill]] %s2101_s2 }
   0x4   :  { %2125 = sst [smem:[#allocation16_spill]] %s2113_s14 }
   0x5   :  { %2126 = sst [smem:[#allocation17_spill]] %s2114_s15 }
   0x6   :  { %20 = vsyncpa [#allocation5], 0 }
   0x7   :  { %22 = vsyncpa [#allocation5 + $0x1], 0  ;;  %s1791_s18 = smov 0   ;;  %s1793_s19 = smov 0  }
   0x8   :  { %s1795_s20 = smov 0   ;;  %s1797_s21 = smov 0  }
   0x9   :  { %s1799_s22 = smov 0   ;;  %s1801_s23 = smov 0  }
   0xa   :  { %s1803_s24 = smov 0   ;;  %s1805_s25 = smov 0  }
   0xb LB: > { %2127 = sst [smem:[#allocation7_spill]] %s1680_s23  ;;  %s1297_s26 = sadd.s32 4294967295, %s1688_s25   ;;  %s1688_s25 = sphi %s1805_s25, %s28_s25   ;;  %s1684_s24 = sphi %s1803_s24, %s2153_s24   ;;  %s1680_s23 = sphi %s1801_s23, %s2152_s23   ;;  %s1676_s22 = sphi %s1799_s22, %s2151_s22   ;;  %s1672_s21 = sphi %s1797_s21, %s2150_s21   ;;  %s1668_s20 = sphi %s1795_s20, %s2156_s20   ;;  %s1664_s19 = sphi %s1793_s19, %s2155_s19   ;;  %s1660_s18 = sphi %s1791_s18, %s2154_s18  }
   0xc   : > { %2128 = sst [smem:[#allocation8_spill]] %s1684_s24  ;;  %s1298_s27 = sadd.s32 4294967294, %s1688_s25  }
   0xd   : > { %s37_s28 = sadd.s32 1, %s1680_s23  ;;  %s40_s29 = sadd.s32 1, %s1684_s24 }
   0xe   : > { %p38_p0 = scmp.ge.s32.totalorder %s37_s28, 2  ;;  %p379_p1 = scmp.ne.s32.totalorder %s1668_s20, %s1664_s19 }
   0xf   : > { %p380_p2 = scmp.eq.s32.totalorder %s1297_s26, 3  ;;  %p385_p5 = scmp.ne.s32.totalorder %s1664_s19, %s1660_s18 }
  0x10   : > { %s2158_s28 = smov (%p38_p0, %s37_s28), 0  ;;  %s2160_s29 = smov (!%p38_p0, %s40_s29), %s1684_s24 }
  0x11   : > { %2129 = sst [smem:[#allocation9_spill]] %s2158_s28  ;;  %s365_s30 = ssub.s32 %s1680_s23, %s2158_s28 }
  0x12   : > { %p1842_p3 = por %p380_p2, %p379_p1  ;;  %p42_p4 = scmp.ge.s32.totalorder %s2160_s29, 2 }
  0x13   : > { %p386_p6 = scmp.eq.s32.totalorder %s1298_s27, 3  ;;  %p1301_p7 = scmp.ge.s32.totalorder %s1688_s25, 1 }
  0x14   : > { %s2162_s29 = smov (%p42_p4, %s2160_s29), 0  ;;  %p454_p9 = scmp.lt.s32.totalorder %s1688_s25, 5 }
  0x15   : > { %2131 = sst [smem:[#allocation10_spill]] %s2162_s29  ;;  %p1851_p8 = por %p386_p6, %p385_p5 }
  0x16   : > { %s364_s26 = ssub.s32 %s1684_s24, %s2162_s29  ;;  %s369_s15 = sadd.s32 1, %s1668_s20 }
  0x17   : > { %s2132_s17 = scalar_select %p1851_p8, 1, 0 }
  0x18   : > { %s366_s14 = sor.u32 %s365_s30, %s364_s26  ;;  %p455_p10 = pnand %p1301_p7, %p454_p9 }
  0x19   : > { %2133 = sst [smem:[#allocation11_spill]] %s2132_s17  ;;  %p367_p11 = scmp.eq.s32.totalorder %s366_s14, 0 }
  0x1a   : > { %458 = sbr.rel (%p455_p10) target bundleno = 2820 (0xb04), region = 80  ;;  %s2121_s27 = sand.u32 (!%p455_p10), 1, %s1664_s19  }
  0x1b   : > { %s1860_s28 = scalar_select %p367_p11, %s1668_s20, %s369_s15  }
  0x1c   : > { %p502_p12 = scmp.lt.s32.totalorder (!%p455_p10), %s1676_s22, 1  ;;  %s1866_s23 = sshll.u32 (!%p455_p10), %s2121_s27, 3 }
  0x1d   : > { %2134 = sst [smem:[#allocation12_spill]] %s1860_s28  ;;  %p1306_p13 = scmp.ne.s32.totalorder (!%p455_p10), %s1672_s21, 0 }
  0x1e   : > { %s2135_s0 = sld [smem:[#allocation13_spill]] (!%p455_p10) }
  0x1f   : > { %s503_s29 = scalar_select %p502_p12, %s1676_s22, 1 }
  0x20   : > { %512 = sbr.rel (%p1306_p13) target bundleno = 678 (0x2a6), region = 84  ;;  %s2136_s1 = sld [smem:[#allocation14_spill]] (!%p1306_p13) }
  0x21   : > { %s1358_s24 = sshll.u32 %s503_s29, 4  ;;  %s2137_s2 = sld [smem:[#allocation15_spill]] (!%p1306_p13) }
  0x22   : > { %s1889_s27 = smov (!%p1306_p13), 0  }
  0x24   : > { %s1873_s14 = scalar_lea.vmem %s2135_s0, %s1358_s24 }
  0x25   : > { %v513_v0 = vld [vmem:[%s1873_s14] sm:$0xff]  ;;  %vm517_vm0 = vcmask 261120   ;;  %v514_v1 = vld [vmem:[%s1873_s14 + $0x8] sm:$0xff] }
  0x26   : > { %v518_v2 = vsel %vm517_vm0, %v513_v0, 0.0  ;;  %v521_v3 = vsel %vm517_vm0, %v514_v1, 0.0  ;;  %v1307_v22 = vld [vmem:[%s2136_s1] ss:$0 sm:$0xff] }
  0x27   : > { %519 = vadd.xlane.f32.xlu0 %v518_v2  ;;  %v1308_v26 = vld [vmem:[%s2137_s2] ss:$0 sm:$0xff] }
  0x2b   : > { %522 = vadd.xlane.f32.xlu0 %v521_v3 }
  0xb0   : > { %v520_v4 = vpop.xlane.xlu0 %519 }
  0xb1   : > { %v525_v5 = vmul.f32 0.03125, %v520_v4 }
  0xb3   : > { %v527_v6 = vsub.f32 %v513_v0, %v525_v5 }
  0xb4   : > { %v523_v7 = vpop.xlane.xlu0 %522 }
  0xb5   : > { %v526_v8 = vmul.f32 0.03125, %v523_v7  ;;  %v529_v9 = vmul.f32 %v527_v6, %v527_v6 }
  0xb7   : > { %v528_v10 = vsub.f32 %v514_v1, %v526_v8  ;;  %v531_v11 = vsel %vm517_vm0, %v529_v9, 0.0 }
  0xb8   : > { %532 = vadd.xlane.f32.xlu1 %v531_v11 }
  0xb9   : > { %v530_v12 = vmul.f32 %v528_v10, %v528_v10 }
  0xbb   : > { %v534_v13 = vsel %vm517_vm0, %v530_v12, 0.0 }
  0xbc   : > { %535 = vadd.xlane.f32.xlu1 %v534_v13 }
 0x141   : > { %v533_v14 = vpop.xlane.xlu1 %532 }
 0x142   : > { %v537_v15 = vmul.f32 0.03125, %v533_v14 }
 0x144   : > { %v539_v16 = vadd.f32 1e-05, %v537_v15 }
 0x145   : > { %v536_v17 = vpop.xlane.xlu1 %535 }
 0x146   : > { %1556 = vrsqrt.f32 %v539_v16  ;;  %v538_v18 = vmul.f32 0.03125, %v536_v17 }
 0x148   : > { %v540_v19 = vadd.f32 1e-05, %v538_v18 }
 0x14a   : > { %1558 = vrsqrt.f32 %v540_v19 }
 0x153   : > { %v1557_v20 = vpop.eup %1556 }
 0x154   : > { %v543_v21 = vmul.f32 %v1557_v20, %v527_v6 }
 0x156   : > { %v551_v24 = vmul.f32 %v1307_v22, %v543_v21 }
 0x157   : > { %v1559_v23 = vpop.eup %1558 }
 0x158   : > { %v544_v25 = vmul.f32 %v1559_v23, %v528_v10  ;;  %v559_v28 = vadd.f32 %v1308_v26, %v551_v24 }
 0x15a   : > { %v552_v27 = vmul.f32 %v1307_v22, %v544_v25 }
 0x15c   : > { %v560_v29 = vadd.f32 %v1308_v26, %v552_v27 }
 0x15e   : > { %v561_v30 = vpack.c.bf16 %v560_v29, %v559_v28 }
 0x15f LB: >> { %v1702_v31 = vmov 0.0   ;;  %vm1703_vm1 = vmmov 0   ;;  %s1359_s24 = sshll.u32 %s1692_s27, 4  ;;  %s575_s0 = scalar_lea.vmem %s2105_s6, %s1692_s27  ;;  %vm650_vm2 = vcmask 60416   ;;  %s1692_s27 = sphi %s1889_s27, %s567_s27  }
 0x160   : >> { %1391 = vmatprep.subr.bf16.mxu0 %v1702_v31  ;;  %1395 = vmatprep.mubr.msk.bf16.mxu0 %vm1703_vm1, %v1702_v31  ;;  %s570_s26 = scalar_lea.vmem %s2104_s5, %s1359_s24  ;;  %v1311_v34 = vld [vmem:[%s575_s0] ss:$0 sm:$0xff]  ;;  %s1362_s28 = sshll.u32 %s1692_s27, 3 }
 0x161   : >> { %v1560_v32 = vld [vmem:[%s570_s26 + $0x8] sm:$0xff]   ;;  %v1561_v33 = vld [vmem:[%s570_s26] sm:$0xff]   ;;  %s1704_s24 = smov 120   ;;  %s649_s29 = scalar_lea.vmem [#allocation2], %s1362_s28 }
 0x162   : >> { %1392 = vmatpush3.bf16.msra.mxu0 %v1560_v32  ;;  %s660_s0 = scalar_lea.vmem [#allocation3], %s1362_s28  ;;  %s567_s27 = sadd.s32 1, %s1692_s27  }
 0x163   : >> { %1393 = vmatprep.subr.bf16.mxu0 %v1702_v31  ;;  %p564_p0 = scmp.ge.s32.totalorder %s567_s27, 4  }
 0x166   : >> { %1394 = vmatpush3.bf16.msra.mxu0 %v1561_v33 }
 0x169   : >> { %1396 = vmatmul.mubr.msk.bf16.vlgmr.msra.gmra.mxu0 %vm517_vm0, %v561_v30 }
 0x229   : >> { %v632_v35 = vpop.f32.mrf.mxu0 }
 0x22a   : >> { %v633_v36 = vadd.f32 %v1311_v34, %v632_v35 }
 0x22b   : >> { %v1397_v37 = vpop.f32.mrf.mxu0 }
 0x22c   : >> { %v1360_v38 = vpack.c.bf16 %v633_v36, %v633_v36 }
 0x22d   : >> { %v635_v39 = vpop.f32.mrf.mxu0 }
 0x22e   : >> { %v636_v40 = vadd.f32 %v1311_v34, %v635_v39  ;;  %653 = vrot.lane.b32.xlu0 %v1360_v38, %s1704_s24  ;;  %651 = vst.msk [vmem:[%s649_s29] sm:$0xf] %vm650_vm2, %v1360_v38 }
 0x22f   : >> { %v1398_v41 = vpop.f32.mrf.mxu0 }
 0x230   : >> { %v1361_v42 = vpack.c.bf16 %v636_v40, %v636_v40 }
 0x232   : >> { %655 = vrot.lane.b32.xlu0 %v1361_v42, %s1704_s24  ;;  %652 = vst.msk [vmem:[%s649_s29 + $0x4] sm:$0xf] %vm650_vm2, %v1361_v42 }
 0x2a0   : >> { %v654_v43 = vpop.permute.xlu0 %653 }
 0x2a1   : >> { %661 = vst.msk [vmem:[%s660_s0] sm:$0xf] %vm650_vm2, %v654_v43  ;;  %566 = sbr.rel (!%p564_p0) target bundleno = 351 (0x15f), region = 143 }
 0x2a4   : >> { %v656_v44 = vpop.permute.xlu0 %655 }
 0x2a5   : >> { %662 = vst.msk [vmem:[%s660_s0 + $0x4] sm:$0xf] %vm650_vm2, %v656_v44 }
 0x2a6 PF: > { %s2138_s17 = sshll.u32 %s1672_s21, 3  ;;  %vm667_vm3 = vcmask 261120   ;;  %v697_v52 = vlaneseq  ;;  %v1705_v57 = vmov -1e+30   ;;  %s2140_s1 = sld [smem:[#allocation14_spill]]  ;;  %v1934_v5 = vmov 0.0  }
 0x2a7   : > { %s663_s15 = scalar_lea.vmem %s1873_s14, %s2138_s17  ;;  %s2139_s28 = smov %s2138_s17 }
 0x2a8   : > { %v1914_v45 = vld [vmem:[%s663_s15] sm:$0xff]  ;;  %v698_v53 = vshrl.u32 %v697_v52, 7  ;;  %v699_v54 = vstv %s2139_s28  ;;  %v702_v56 = vand.u32 127, %v697_v52  ;;  %s2141_s2 = sld [smem:[#allocation15_spill]]  ;;  %s1936_s24 = smov 0  }
 0x2a9   : > { %v668_v46 = vsel %vm667_vm3, %v1914_v45, 0.0 }
 0x2aa   : > { %669 = vadd.xlane.f32.xlu0 %v668_v46  ;;  %v700_v55 = vadd.s32 %v699_v54, %v698_v53 }
 0x2ac   : > { %vm703_vm4 = vcmp.le.s32.totalorder %v702_v56, %v700_v55  ;;  %v1320_v63 = vld [vmem:[%s2140_s1] ss:$0 sm:$0xff] }
 0x2ad   : > { %v1922_v58 = vsel %vm703_vm4, 0.0, %v1705_v57 }
 0x2ae   : > { %v1321_v1 = vld [vmem:[%s2141_s2] ss:$0 sm:$0xff] }
 0x333   : > { %v670_v47 = vpop.xlane.xlu0 %669 }
 0x334   : > { %v672_v48 = vmul.f32 0.03125, %v670_v47 }
 0x336   : > { %v673_v49 = vsub.f32 %v1914_v45, %v672_v48 }
 0x338   : > { %v674_v50 = vmul.f32 %v673_v49, %v673_v49 }
 0x33a   : > { %v675_v51 = vsel %vm667_vm3, %v674_v50, 0.0 }
 0x33b   : > { %676 = vadd.xlane.f32.xlu0 %v675_v51 }
 0x3c4   : > { %v677_v59 = vpop.xlane.xlu0 %676 }
 0x3c5   : > { %v678_v60 = vmul.f32 0.03125, %v677_v59 }
 0x3c7   : > { %v679_v61 = vadd.f32 1e-05, %v678_v60 }
 0x3c9   : > { %1562 = vrsqrt.f32 %v679_v61 }
 0x3d6   : > { %v1563_v62 = vpop.eup %1562 }
 0x3d7   : > { %v681_v0 = vmul.f32 %v1563_v62, %v673_v49 }
 0x3d9   : > { %v688_v2 = vmul.f32 %v1320_v63, %v681_v0 }
 0x3db   : > { %v1930_v3 = vadd.f32 %v1321_v1, %v688_v2 }
 0x3dd   : > { %v696_v4 = vpack.c.bf16 %v1930_v3, %v1930_v3 }
 0x3de LB: >> { %v1706_v6 = vmov 0.0   ;;  %vm1707_vm5 = vmmov 0   ;;  %s1364_s29 = sshll.u32 %s1700_s24, 4  ;;  %s1365_s0 = sshll.u32 %s1700_s24, 3  ;;  %vm797_vm6 = vcmask 64512   ;;  %vm844_vm7 = vcmask 130048   ;;  %s1700_s24 = sphi %s1936_s24, %s710_s24   ;;  %v1696_v5 = vphi %v1934_v5, %v2142_v5  }
 0x3df   : >> { %1399 = vmatprep.subr.bf16.mxu0 %v1706_v6  ;;  %1403 = vmatprep.mubr.msk.bf16.mxu0 %vm1707_vm5, %v1706_v6  ;;  %s714_s28 = scalar_lea.vmem %s2102_s3, %s1364_s29  ;;  %s785_s27 = scalar_lea.vmem [#allocation2], %s1365_s0  ;;  %vm913_vm8 = vcmask 1043456  }
 0x3e0   : >> { %1407 = vmatprep.subr.bf16.mxu1 %v1706_v6  ;;  %1409 = vmatprep.mubr.msk.bf16.mxu1 %vm1707_vm5, %v1706_v6  ;;  %v1564_v7 = vld [vmem:[%s714_s28 + $0x8] sm:$0xff]   ;;  %v1565_v8 = vld [vmem:[%s714_s28] sm:$0xff]   ;;  %s1951_s14 = scalar_lea.vmem [#allocation3], %s1365_s0  ;;  %s719_s29 = scalar_lea.vmem %s2103_s4, %s1700_s24 }
 0x3e1   : >> { %1400 = vmatpush3.bf16.msra.mxu0 %v1564_v7  ;;  %v1566_v9 = vld [vmem:[%s785_s27] sm:$0xff]   ;;  %s1335_s0 = sshll.u32 %s1700_s24, 2  ;;  %s710_s24 = sadd.s32 1, %s1700_s24  }
 0x3e2   : >> { %1401 = vmatprep.subr.bf16.mxu0 %v1706_v6  ;;  %v802_v10 = vsel %vm797_vm6, %v1566_v9, 0  ;;  %v1324_v11 = vld [vmem:[%s719_s29] ss:$0 sm:$0xff]  ;;  %s908_s28 = scalar_lea.vmem %s2106_s7, %s1335_s0  ;;  %p707_p1 = scmp.ge.s32.totalorder %s710_s24, 4  }
 0x3e3   : >> { %1408 = vmatpush3.bf16.xpose.msra.mxu1 %v802_v10  ;;  %v1567_v29 = vld [vmem:[%s1951_s14] sm:$0xff]   ;;  %v1572_v56 = vld [vmem:[%s2110_s11 + $0x8] sm:$0xff] (%p707_p1)   ;;  %v1708_v57 = vmov (%p707_p1), 0.0   ;;  %vm1709_vm9 = vmmov (%p707_p1), 0   ;;  %v1575_v59 = vld [vmem:[%s2112_s13 + $0x30] sm:$0xff] (%p707_p1)   ;;  %s1354_s15 = sshll.u32 (%p707_p1), %s1676_s22, 1 }
 0x3e4   : >> { %1419 = vmatprep.subr.bf16.mxu1 %v1706_v6  ;;  %v909_v30 = vld [vmem:[%s908_s28] sm:$0xf]  ;;  %v1576_v60 = vld [vmem:[%s2112_s13 + $0x28] sm:$0xff] (%p707_p1)   ;;  %v1578_v62 = vld [vmem:[%s2112_s13 + $0x18] sm:$0xff] (%p707_p1)   ;;  %s1190_s28 = sadd.s32 (%p707_p1), %s1672_s21, %s1354_s15  ;;  %s2143_s24 = sld [smem:[#allocation16_spill]] (%p707_p1) }
 0x3e5   : >> { %1402 = vmatpush3.bf16.msra.mxu0 %v1565_v8  ;;  %v915_v31 = vsel %vm913_vm8, %v909_v30, 0  ;;  %v1337_v47 = vld [vmem:[%s2107_s8] ss:$0 sm:$0xff] (%p707_p1)  ;;  %v1579_v63 = vld [vmem:[%s2112_s13 + $0x10] sm:$0xff] (%p707_p1)   ;;  %v1580_v10 = vld [vmem:[%s2112_s13 + $0x8] sm:$0xff] (%p707_p1)   ;;  %s1355_s30 = sshll.u32 (%p707_p1), %s1190_s28, 7 }
 0x3e6   : >> { %1413 = vmatprep.subr.bf16.mxu0 %v1706_v6  ;;  %v1577_v61 = vld [vmem:[%s2112_s13 + $0x20] sm:$0xff] (%p707_p1)   ;;  %s2144_s26 = scalar_lea.vmem (%p707_p1), [#allocation4], %s1866_s23  ;;  %s2145_s1 = sld [smem:[#allocation17_spill]] (%p707_p1) }
 0x3e7   : > { %s1194_s29 = sshll.u32 (%p707_p1), %s2144_s26, 4  ;;  %s2146_s21 = smov (%p707_p1), %s2144_s26  ;;  %s2044_s29 = int_to_ptr.vmem [resolvable:$true] %s1194_s29 }
 0x3e8   : >> { %1404 = vmatmul.mubr.msk.bf16.vlgmr.msra.gmra.mxu0 %vm667_vm3, %v696_v4  ;;  %v1338_v4 = vld [vmem:[%s2108_s9] ss:$0 sm:$0xff] (%p707_p1)  ;;  %s2147_s22 = sand.u32 (%p707_p1), 1, %s1664_s19   ;;  %s1584_s28 = scalar_lea.vmem (%p707_p1), %s2044_s29, 128 }
 0x3e9   : >> { %1415 = vmatprep.mubr.msk.bf16.mxu0 %vm1707_vm5, %v1706_v6  ;;  %1414 = vmatpush3.bf16.msra.mxu0 %v1567_v29  ;;  %s1179_s15 = scalar_lea.sflag (%p707_p1), [#allocation5], %s2147_s22  ;;  %p1585_p2 = scmp.ne.s32.totalorder (%p707_p1), %s2044_s29, %s1584_s28 }
 0x3ea   : > { %1425 = vmatprep.subr.bf16.mxu0 (%p707_p1), %v1708_v57  ;;  %s1710_s27 = smov (%p707_p1), [#allocation4]  }
 0x3eb   : > { %p1586_p4 = pnand (%p707_p1), %p1585_p2, %p1842_p3  ;;  %s1588_s14 = sshll.u32 (%p707_p1), %s1710_s27, 4  ;;  %s1589_s14 = int_to_ptr.vmem [resolvable:$false] %s1588_s14 }
 0x3ec   : > { %s2042_s2 = scalar_lea.hbm (%p707_p1), %s2145_s1, %s1355_s30  ;;  %p1591_p6 = scmp.lt.s32.totalorder (%p707_p1), %s2044_s29, %s1589_s14 }
 0x3ed   : > { %p1587_p5 = pneg (%p707_p1), %p1586_p4 }
 0x4a8   : >> { %v776_v12 = vpop.f32.mrf.mxu0 }
 0x4a9   : >> { %v777_v13 = vadd.f32 %v1324_v11, %v776_v12  ;;  %v1581_v11 = vld [vmem:[%s2112_s13] sm:$0xff] (%p707_p1)  }
 0x4aa   : >> { %v1405_v14 = vpop.f32.mrf.mxu0  ;;  %v1340_v12 = vld [vmem:[%s2111_s12] ss:$0 sm:$0xff] (%p707_p1) }
 0x4ab   : >> { %v782_v15 = vpack.c.bf16 %v777_v13, %v777_v13 }
 0x4ac   : >> { %v779_v16 = vpop.f32.mrf.mxu0 }
 0x4ad   : >> { %1410 = vmatmul.mubr.msk.bf16.vlgmr.msra.gmra.mxu1 %vm797_vm6, %v782_v15 }
 0x4ae   : >> { %v1406_v17 = vpop.f32.mrf.mxu0  ;;  %1421 = vmatprep.mubr.msk.bf16.mxu1 %vm1707_vm5, %v1706_v6  ;;  %1420 = vmatpush3.bf16.msra.mxu1 %v915_v31  ;;  %v1339_v6 = vld [vmem:[%s2109_s10] ss:$0 sm:$0xff] (%p707_p1) }
 0x4af   : > { %1433 = vmatprep.subr.bf16.mxu1 (%p707_p1), %v1708_v57 }
 0x56d   : >> { %v838_v18 = vpop.f32.mrf.mxu1 }
 0x56e   : >> { %v839_v19 = vadd.f32 %v838_v18, %v1922_v58  ;;  %v1574_v58 = vld [vmem:[%s2112_s13 + $0x38] sm:$0xff] (%p707_p1)  }
 0x56f   : >> { %v1411_v20 = vpop.f32.mrf.mxu1 }
 0x570   : >> { %v845_v21 = vsel %vm844_vm7, %v839_v19, -inf  ;;  %v1344_v20 = vld [vmem:[%s2143_s24] ss:$0 sm:$0xff] (%p707_p1)  ;;  %s1590_s24 = scalar_lea.vmem (%p707_p1), %s1589_s14, 256 }
 0x571   : >> { %846 = vmax.xlane.f32.xlu0 %v845_v21  ;;  %v841_v22 = vpop.f32.mrf.mxu1  ;;  %p1592_p7 = scmp.lt.s32.totalorder (%p707_p1), %s1590_s24, %s1584_s28 }
 0x573   : >> { %v1412_v23 = vpop.f32.mrf.mxu1  ;;  %p1593_p9 = por (%p707_p1), %p1592_p7, %p1591_p6 }
 0x575   : > { %p1594_p10 = pnand (%p707_p1), %p1593_p9, %p1587_p5 }
 0x5fa   : >> { %v847_v24 = vpop.xlane.xlu0 %846 }
 0x5fb   : >> { %v848_v25 = vsub.f32 %v839_v19, %v847_v24 }
 0x5fd   : >> { %v849_v26 = vmul.f32 1.442695, %v848_v25 }
 0x5ff   : >> { %1568 = vpow2.f32 %v849_v26 }
 0x60c   : >> { %v1569_v27 = vpop.eup %1568 }
 0x60d   : >> { %v851_v28 = vsel %vm844_vm7, %v1569_v27, 0.0 }
 0x60e   : >> { %852 = vadd.xlane.f32.xlu0 %v851_v28 }
 0x697   : >> { %v853_v32 = vpop.xlane.xlu0 %852 }
 0x698   : >> { %1570 = vrcp.f32 %v853_v32 }
 0x6a5   : >> { %v1571_v33 = vpop.eup %1570 }
 0x6a6   : >> { %v855_v34 = vmul.f32 %v1571_v33, %v1569_v27 }
 0x6a8   : >> { %v856_v35 = vpack.c.bf16 %v855_v34, %v855_v34 }
 0x6aa   : >> { %1416 = vmatmul.mubr.msk.bf16.vlgmr.msra.gmra.mxu0 %vm844_vm7, %v856_v35 }
 0x6ab   : > { %1429 = vmatprep.mubr.msk.bf16.mxu0 (%p707_p1), %vm1709_vm9, %v1708_v57  ;;  %1426 = vmatpush3.bf16.msra.mxu0 (%p707_p1), %v1572_v56 }
 0x6ac   : > { %1427 = vmatprep.subr.bf16.mxu0 (%p707_p1), %v1708_v57 }
 0x76a   : >> { %v900_v36 = vpop.f32.mrf.mxu0 }
 0x76b   : >> { %v906_v37 = vpack.c.bf16 %v900_v36, %v900_v36 }
 0x76c   : >> { %v1417_v38 = vpop.f32.mrf.mxu0 }
 0x76d   : >> { %1422 = vmatmul.mubr.msk.bf16.vlgmr.msra.gmra.mxu1 %vm797_vm6, %v906_v37 }
 0x76e   : >> { %v903_v39 = vpop.f32.mrf.mxu0  ;;  %1449 = vmatprep.mubr.msk.bf16.mxu1 (%p707_p1), %vm1709_vm9, %v1708_v57  ;;  %1434 = vmatpush3.bf16.msra.mxu1 (%p707_p1), %v1574_v58 }
 0x76f   : > { %1435 = vmatprep.subr.bf16.mxu1 (%p707_p1), %v1708_v57 }
 0x770   : >> { %v1418_v40 = vpop.f32.mrf.mxu0 }
 0x772   : > { %1436 = vmatpush3.bf16.msra.mxu1 (%p707_p1), %v1575_v59 }
 0x773   : > { %1437 = vmatprep.subr.bf16.mxu1 (%p707_p1), %v1708_v57 }
 0x776   : > { %1438 = vmatpush3.bf16.msra.mxu1 (%p707_p1), %v1576_v60 }
 0x777   : > { %1439 = vmatprep.subr.bf16.mxu1 (%p707_p1), %v1708_v57 }
 0x77a   : > { %1440 = vmatpush3.bf16.msra.mxu1 (%p707_p1), %v1577_v61 }
 0x77b   : > { %1441 = vmatprep.subr.bf16.mxu1 (%p707_p1), %v1708_v57 }
 0x77e   : > { %1442 = vmatpush3.bf16.msra.mxu1 (%p707_p1), %v1578_v62 }
 0x77f   : > { %1443 = vmatprep.subr.bf16.mxu1 (%p707_p1), %v1708_v57 }
 0x782   : > { %1444 = vmatpush3.bf16.msra.mxu1 (%p707_p1), %v1579_v63 }
 0x783   : > { %1445 = vmatprep.subr.bf16.mxu1 (%p707_p1), %v1708_v57 }
 0x786   : > { %1446 = vmatpush3.bf16.msra.mxu1 (%p707_p1), %v1580_v10 }
 0x787   : > { %1447 = vmatprep.subr.bf16.mxu1 (%p707_p1), %v1708_v57 }
 0x78a   : > { %1448 = vmatpush3.bf16.msra.mxu1 (%p707_p1), %v1581_v11 }
 0x82d   : >> { %v951_v41 = vpop.f32.mrf.mxu1 }
 0x82e   : >> { %v957_v42 = vadd.f32 %v1696_v5, %v951_v41  }
 0x82f   : >> { %v1423_v43 = vpop.f32.mrf.mxu1  ;;  %709 = sbr.rel (!%p707_p1) target bundleno = 990 (0x3de), region = 154 }
 0x830   : >> { %v2142_v5 = vmov %v957_v42  ;;  %v965_v48 = vadd.f32 (%p707_p1), %v1337_v47, %v957_v42 }
 0x831   : >> { %v954_v44 = vpop.f32.mrf.mxu1 }
 0x832   : > { %v1985_v49 = vadd.f32 (%p707_p1), %v965_v48, %v1914_v45  ;;  %v1573_v45 = vld [vmem:[%s2110_s11] sm:$0xff] (%p707_p1)  }
 0x833   : >> { %v1424_v46 = vpop.f32.mrf.mxu1  ;;  %1428 = vmatpush3.bf16.msra.mxu0 (%p707_p1), %v1573_v45 }
 0x834   : > { %v969_v50 = vsel %vm667_vm3, %v1985_v49, 0.0 }
 0x835   : > { %970 = vadd.xlane.f32.xlu0 %v969_v50 }
 0x8be   : > { %v971_v51 = vpop.xlane.xlu0 %970 }
 0x8bf   : > { %v972_v52 = vmul.f32 0.03125, %v971_v51 }
 0x8c1   : > { %v973_v53 = vsub.f32 %v1985_v49, %v972_v52 }
 0x8c3   : > { %v974_v54 = vmul.f32 %v973_v53, %v973_v53 }
 0x8c5   : > { %v975_v55 = vsel %vm667_vm3, %v974_v54, 0.0 }
 0x8c6   : > { %976 = vadd.xlane.f32.xlu0 %v975_v55 }
 0x94f   : > { %v977_v0 = vpop.xlane.xlu0 %976 }
 0x950   : > { %v978_v1 = vmul.f32 0.03125, %v977_v0 }
 0x952   : > { %v979_v2 = vadd.f32 1e-05, %v978_v1 }
 0x954   : > { %1582 = vrsqrt.f32 %v979_v2 }
 0x961   : > { %v1583_v3 = vpop.eup %1582 }
 0x962   : > { %v981_v5 = vmul.f32 %v1583_v3, %v973_v53 }
 0x964   : > { %v988_v7 = vmul.f32 %v1338_v4, %v981_v5 }
 0x966   : > { %v995_v8 = vadd.f32 %v1339_v6, %v988_v7 }
 0x968   : > { %v996_v9 = vpack.c.bf16 %v995_v8, %v995_v8 }
 0x96a   : > { %1430 = vmatmul.mubr.msk.bf16.vlgmr.msra.gmra.mxu0 %vm667_vm3, %v996_v9 }
 0xa2a   : > { %v1057_v13 = vpop.f32.mrf.mxu0 }
 0xa2b   : > { %v1058_v14 = vadd.f32 %v1340_v12, %v1057_v13 }
 0xa2c   : > { %v1431_v15 = vpop.f32.mrf.mxu0 }
 0xa2d   : > { %v1063_v16 = vmax.f32 %v1058_v14, 0.0 }
 0xa2e   : > { %v1060_v17 = vpop.f32.mrf.mxu0 }
 0xa2f   : > { %v1064_v18 = vpack.c.bf16 %v1063_v16, %v1063_v16 }
 0xa30   : > { %v1432_v19 = vpop.f32.mrf.mxu0 }
 0xa31   : > { %1450 = vmatmul.mubr.bf16.vlgmr.msra.gmra.mxu1 %v1064_v18 }
 0xaf1   : > { %v1170_v21 = vpop.f32.mrf.mxu1 }
 0xaf2   : > { %v1171_v22 = vadd.f32 %v1344_v20, %v1170_v21 }
 0xaf3   : > { %v1451_v23 = vpop.f32.mrf.mxu1 }
 0xaf4   : > { %v1176_v24 = vadd.f32 %v1171_v22, %v1985_v49 }
 0xaf5   : > { %v1173_v25 = vpop.f32.mrf.mxu1 }
 0xaf6   : > { %1177 = vst.msk [vmem:[%s2146_s21] sm:$0xff] %vm667_vm3, %v1176_v24 }
 0xaf7   : > { %v1452_v26 = vpop.f32.mrf.mxu1 }
 0xaf8   : > { %1597 = shalt.err (!%p1594_p10)
}
 0xaf9   : > { %s1598_s23 = scalar_lea.hbm %s2042_s2, 128  ;;  %s1602_s0 = scalar_lea.hbm %s2145_s1, 512 }
 0xafa   : > { %p1599_p11 = scmp.ne.s32.totalorder %s2042_s2, %s1598_s23  ;;  %p1603_p0 = scmp.lt.s32.totalorder %s2042_s2, %s2145_s1 }
 0xafb   : > { %p1604_p1 = scmp.lt.s32.totalorder %s1602_s0, %s1598_s23 }
 0xafc   : > { %p1600_p12 = pnand %p1599_p11, %p1842_p3 }
 0xafd   : > { %p1605_p2 = por %p1604_p1, %p1603_p0 }
 0xafe   : > { %p1601_p13 = pneg %p1600_p12 }
 0xb00   : > { %p1606_p4 = pnand %p1605_p2, %p1601_p13 }
 0xb02   : > { %1609 = shalt.err (!%p1606_p4)
}
 0xb03   : > { %1453 = dma.vmem_to_hbm [thread:$0]  (%p1842_p3), %s2044_s29, 128, %s2042_s2, %s1179_s15  }
 0xb04 PF: > { %p1459_p5 = scmp.ge.s32.totalorder %s1688_s25, 2  ;;  %s1206_s28 = sand.u32 1, %s1660_s18  }
 0xb05   : > { %s1207_s27 = scalar_lea.sflag [#allocation5], %s1206_s28 }
 0xb06   : > { %p1456_p6 = pnand %p1459_p5, %p1851_p8 }
 0xb08   : > { %p1457_p7 = pneg %p1456_p6 }
 0xb0a   : > { %1655 = dma.done.wait (%p1457_p7), %s1207_s27, 128  }
 0xb0b   : > { %1657 = vsyncadd (%p1457_p7), %s1207_s27, 4294967168  ;;  %s28_s25 = sadd.s32 1, %s1688_s25   ;;  %s2149_s16 = sld [smem:[#allocation12_spill]] }
 0xb0c   : > { %p25_p9 = scmp.ge.s32.totalorder %s28_s25, 6   ;;  %s2150_s21 = sld [smem:[#allocation7_spill]] }
 0xb0d   : > { %s2151_s22 = sld [smem:[#allocation8_spill]]  ;;  %s2154_s18 = smov %s1664_s19 }
 0xb0e   : > { %s2152_s23 = sld [smem:[#allocation9_spill]]  ;;  %s2155_s19 = smov %s1668_s20 }
 0xb0f   : > { %s2153_s24 = sld [smem:[#allocation10_spill]]  ;;  %27 = sbr.rel (!%p25_p9) target bundleno = 11 (0xb), region = 165 }
 0xb11   : > { %s2156_s20 = smov %s2149_s16 }
 0xb14   :  { %1212 = vsyncpa [#allocation5], 1 }
 0xb15   :  { %1214 = vsyncpa [#allocation5 + $0x1], 1 }

</bundles_post_ra>
